<compile_context>
chip_gen: v7x
topology: tpu7x:2x2x1
jax: 0.10.0
libtpu: 0.0.40
codegen_flags: <defaults>
</compile_context>

<pallas_src>
import math

import jax
import jax.numpy as jnp
from jax.experimental import pallas as pl
from jax.experimental.pallas import tpu as pltpu


def _timestep_embed_kernel(ts_ref, h_ref, w2_ref, b2_ref, o_ref, x_scratch):
    """Gather precomputed SiLU(Linear1(pe)) rows, then Linear2 (all f32)."""
    B = x_scratch.shape[0]
    max_len = h_ref.shape[0]

    # Gather B rows of the hidden table using SMEM-prefetched timestep
    # indices.  Clamp each index: no runtime bounds check exists on VMEM refs.
    for i in range(B):
        idx = jnp.minimum(jnp.maximum(ts_ref[i], 0), max_len - 1)
        x_scratch[pl.ds(i, 1), :] = h_ref[pl.ds(idx, 1), :]

    # Linear 2 entirely in f32; at [8,128]x[128,128] MXU rate is irrelevant.
    out = jnp.dot(x_scratch[...], w2_ref[...],
                  preferred_element_type=jnp.float32) + b2_ref[...]
    o_ref[...] = out.astype(o_ref.dtype)


def prepare_params(pe, w1, b1, w2, b2):
    """One-time (model-init / after every w1,b1 update) parameter prep.

    Precomputes h_table = SiLU(pe @ w1.T + b1) in f32 and hoists the w2
    transpose.  Same [max_len, D] footprint as the raw pe table.
    """
    max_len, _, D = pe.shape
    pe2d = pe.reshape(max_len, D).astype(jnp.float32)
    h = pe2d @ w1.T.astype(jnp.float32) + b1.astype(jnp.float32)[None, :]
    h_table = h * jax.nn.sigmoid(h)                      # SiLU, f32
    w2_t = w2.T.astype(jnp.float32)                      # [in, out] layout
    b2_2d = b2.reshape(1, D).astype(jnp.float32)
    return h_table, w2_t, b2_2d


def timestep_embedder_pallas(timesteps, h_table, w2_t, b2_2d):
    """Forward pass of TimestepEmbedder.

    timesteps: int32 [B]
    h_table:   float32 [max_len, D]   (precomputed SiLU(Linear1(pe)))
    w2_t:      float32 [D, D]         ([in, out] layout, pre-transposed)
    b2_2d:     float32 [1, D]
    returns:   float32 [B, 1, D]
    """
    B = timesteps.shape[0]
    max_len, D = h_table.shape

    cost = pl.CostEstimate(
        flops=2 * B * D * D,                        # single B x D x D matmul
        transcendentals=0,                          # sigmoid is precomputed
        bytes_accessed=(max_len * D * 4             # h_table
                        + D * D * 4                 # w2
                        + D * 4                     # b2
                        + B * 4                     # timesteps
                        + B * D * 4),               # output
    )

    out = pl.pallas_call(
        _timestep_embed_kernel,
        out_shape=jax.ShapeDtypeStruct((B, D), jnp.float32),
        grid_spec=pltpu.PrefetchScalarGridSpec(
            num_scalar_prefetch=1,                  # timesteps -> SMEM
            grid=(1,),
            in_specs=[
                pl.BlockSpec((max_len, D), lambda i, ts: (0, 0)),  # h_table
                pl.BlockSpec((D, D), lambda i, ts: (0, 0)),        # w2_t
                pl.BlockSpec((1, D), lambda i, ts: (0, 0)),        # b2
            ],
            out_specs=pl.BlockSpec((B, D), lambda i, ts: (0, 0)),
            scratch_shapes=[pltpu.VMEM((B, D), jnp.float32)],
        ),
        compiler_params=pltpu.CompilerParams(
            dimension_semantics=("arbitrary",)      # one grid point, one core
        ),
        cost_estimate=cost,
    )(timesteps, h_table, w2_t, b2_2d)

    return out.reshape(B, 1, D)


def make_positional_encoding(max_len, d_model):
    """Standard sinusoidal PE buffer, shape [max_len, 1, d_model] (matches MDM)."""
    position = jnp.arange(max_len, dtype=jnp.float32)[:, None]
    div_term = jnp.exp(
        jnp.arange(0, d_model, 2, dtype=jnp.float32) * (-math.log(10000.0) / d_model)
    )
    pe = jnp.zeros((max_len, d_model), dtype=jnp.float32)
    pe = pe.at[:, 0::2].set(jnp.sin(position * div_term))
    pe = pe.at[:, 1::2].set(jnp.cos(position * div_term))
    return pe[:, None, :]  # [max_len, 1, d_model]


def reference_forward_f32(timesteps, pe, w1, b1, w2, b2):
    """Pure-JAX f32 reference mirroring the PyTorch module exactly."""
    x = pe[timesteps]                       # [B, 1, D]
    h = x @ w1.T + b1
    h = h * jax.nn.sigmoid(h)               # SiLU
    return h @ w2.T + b2                    # [B, 1, D]


if __name__ == "__main__":
    latent_dim = 128   # D (lane-aligned)
    max_len = 256
    batch = 8          # sublane-aligned

    key = jax.random.PRNGKey(0)
    k1, k2, k3, k4, k5 = jax.random.split(key, 5)

    # PyTorch Linear layout: weight [out, in], bias [out].
    scale = 1.0 / math.sqrt(latent_dim)
    w1 = jax.random.uniform(k1, (latent_dim, latent_dim), jnp.float32, -scale, scale)
    b1 = jax.random.uniform(k2, (latent_dim,), jnp.float32, -scale, scale)
    w2 = jax.random.uniform(k3, (latent_dim, latent_dim), jnp.float32, -scale, scale)
    b2 = jax.random.uniform(k4, (latent_dim,), jnp.float32, -scale, scale)

    pe = make_positional_encoding(max_len, latent_dim)
    timesteps = jax.random.randint(k5, (batch,), 0, max_len, dtype=jnp.int32)

    # One-time parameter prep (hoisted out of the per-call path).
    h_table, w2_t, b2_2d = prepare_params(pe, w1, b1, w2, b2)

    fwd = jax.jit(timestep_embedder_pallas)
    out = fwd(timesteps, h_table, w2_t, b2_2d)
    out = jax.block_until_ready(out)

    assert out.shape == (batch, 1, latent_dim)

    # Check vs. the PyTorch-equivalent f32 reference (tolerance covers XLA /
    # Mosaic default matmul-precision differences; no bf16 quantization of
    # weights or activations remains in the kernel path).
    ref_f32 = reference_forward_f32(timesteps, pe, w1, b1, w2, b2)
    assert jnp.allclose(out, ref_f32, atol=1e-2, rtol=1e-2)

    print("KERNEL_OK")
</pallas_src>

<mosaic_0001>
module attributes {stable_mosaic.version = 11 : i64} {
  func.func @_timestep_embed_kernel(%arg0: i32, %arg1: memref<8xi32, #tpu.memory_space<smem>>, %arg2: memref<256x128xf32, #tpu.memory_space<vmem>>, %arg3: memref<128x128xf32, #tpu.memory_space<vmem>>, %arg4: memref<1x128xf32, #tpu.memory_space<vmem>>, %arg5: memref<8x128xf32, #tpu.memory_space<vmem>>, %arg6: memref<8x128xf32, #tpu.memory_space<vmem>>) attributes {dimension_semantics = [#tpu.dimension_semantics<arbitrary>], iteration_bounds = array<i64: 1>, scalar_prefetch = 1 : i64, scratch_operands = 1 : i64, tpu.core_type = #tpu.core_type<tc>, window_params = [{pipeline_mode = #tpu.pipeline_mode<synchronous>, transform_indices = @transform_0, window_bounds = array<i64: 256, 128>}, {pipeline_mode = #tpu.pipeline_mode<synchronous>, transform_indices = @transform_1, window_bounds = array<i64: 128, 128>}, {pipeline_mode = #tpu.pipeline_mode<synchronous>, transform_indices = @transform_2, window_bounds = array<i64: 1, 128>}, {pipeline_mode = #tpu.pipeline_mode<synchronous>, transform_indices = @transform_3, window_bounds = array<i64: 8, 128>}]} {
    %c0 = arith.constant 0 : index
    %0 = memref.load %arg1[%c0] : memref<8xi32, #tpu.memory_space<smem>>
    %c0_i32 = arith.constant 0 : i32
    %1 = arith.maxsi %0, %c0_i32 : i32
    %c255_i32 = arith.constant 255 : i32
    %2 = arith.minsi %1, %c255_i32 : i32
    %3 = arith.index_cast %2 : i32 to index
    %c0_0 = arith.constant 0 : index
    %4 = vector.load %arg2[%3, %c0_0] : memref<256x128xf32, #tpu.memory_space<vmem>>, vector<1x128xf32>
    %c0_1 = arith.constant 0 : index
    %c0_2 = arith.constant 0 : index
    %5 = vector.load %arg6[%c0_1, %c0_2] : memref<8x128xf32, #tpu.memory_space<vmem>>, vector<1x128xf32>
    tpu.vector_store %arg6[%c0_1, %c0_2], %4 {strides = array<i32>} : memref<8x128xf32, #tpu.memory_space<vmem>>, vector<1x128xf32>,
    %c1 = arith.constant 1 : index
    %6 = memref.load %arg1[%c1] : memref<8xi32, #tpu.memory_space<smem>>
    %c0_i32_3 = arith.constant 0 : i32
    %7 = arith.maxsi %6, %c0_i32_3 : i32
    %c255_i32_4 = arith.constant 255 : i32
    %8 = arith.minsi %7, %c255_i32_4 : i32
    %9 = arith.index_cast %8 : i32 to index
    %c0_5 = arith.constant 0 : index
    %10 = vector.load %arg2[%9, %c0_5] : memref<256x128xf32, #tpu.memory_space<vmem>>, vector<1x128xf32>
    %c1_6 = arith.constant 1 : index
    %c0_7 = arith.constant 0 : index
    %11 = vector.load %arg6[%c1_6, %c0_7] : memref<8x128xf32, #tpu.memory_space<vmem>>, vector<1x128xf32>
    tpu.vector_store %arg6[%c1_6, %c0_7], %10 {strides = array<i32>} : memref<8x128xf32, #tpu.memory_space<vmem>>, vector<1x128xf32>,
    %c2 = arith.constant 2 : index
    %12 = memref.load %arg1[%c2] : memref<8xi32, #tpu.memory_space<smem>>
    %c0_i32_8 = arith.constant 0 : i32
    %13 = arith.maxsi %12, %c0_i32_8 : i32
    %c255_i32_9 = arith.constant 255 : i32
    %14 = arith.minsi %13, %c255_i32_9 : i32
    %15 = arith.index_cast %14 : i32 to index
    %c0_10 = arith.constant 0 : index
    %16 = vector.load %arg2[%15, %c0_10] : memref<256x128xf32, #tpu.memory_space<vmem>>, vector<1x128xf32>
    %c2_11 = arith.constant 2 : index
    %c0_12 = arith.constant 0 : index
    %17 = vector.load %arg6[%c2_11, %c0_12] : memref<8x128xf32, #tpu.memory_space<vmem>>, vector<1x128xf32>
    tpu.vector_store %arg6[%c2_11, %c0_12], %16 {strides = array<i32>} : memref<8x128xf32, #tpu.memory_space<vmem>>, vector<1x128xf32>,
    %c3 = arith.constant 3 : index
    %18 = memref.load %arg1[%c3] : memref<8xi32, #tpu.memory_space<smem>>
    %c0_i32_13 = arith.constant 0 : i32
    %19 = arith.maxsi %18, %c0_i32_13 : i32
    %c255_i32_14 = arith.constant 255 : i32
    %20 = arith.minsi %19, %c255_i32_14 : i32
    %21 = arith.index_cast %20 : i32 to index
    %c0_15 = arith.constant 0 : index
    %22 = vector.load %arg2[%21, %c0_15] : memref<256x128xf32, #tpu.memory_space<vmem>>, vector<1x128xf32>
    %c3_16 = arith.constant 3 : index
    %c0_17 = arith.constant 0 : index
    %23 = vector.load %arg6[%c3_16, %c0_17] : memref<8x128xf32, #tpu.memory_space<vmem>>, vector<1x128xf32>
    tpu.vector_store %arg6[%c3_16, %c0_17], %22 {strides = array<i32>} : memref<8x128xf32, #tpu.memory_space<vmem>>, vector<1x128xf32>,
    %c4 = arith.constant 4 : index
    %24 = memref.load %arg1[%c4] : memref<8xi32, #tpu.memory_space<smem>>
    %c0_i32_18 = arith.constant 0 : i32
    %25 = arith.maxsi %24, %c0_i32_18 : i32
    %c255_i32_19 = arith.constant 255 : i32
    %26 = arith.minsi %25, %c255_i32_19 : i32
    %27 = arith.index_cast %26 : i32 to index
    %c0_20 = arith.constant 0 : index
    %28 = vector.load %arg2[%27, %c0_20] : memref<256x128xf32, #tpu.memory_space<vmem>>, vector<1x128xf32>
    %c4_21 = arith.constant 4 : index
    %c0_22 = arith.constant 0 : index
    %29 = vector.load %arg6[%c4_21, %c0_22] : memref<8x128xf32, #tpu.memory_space<vmem>>, vector<1x128xf32>
    tpu.vector_store %arg6[%c4_21, %c0_22], %28 {strides = array<i32>} : memref<8x128xf32, #tpu.memory_space<vmem>>, vector<1x128xf32>,
    %c5 = arith.constant 5 : index
    %30 = memref.load %arg1[%c5] : memref<8xi32, #tpu.memory_space<smem>>
    %c0_i32_23 = arith.constant 0 : i32
    %31 = arith.maxsi %30, %c0_i32_23 : i32
    %c255_i32_24 = arith.constant 255 : i32
    %32 = arith.minsi %31, %c255_i32_24 : i32
    %33 = arith.index_cast %32 : i32 to index
    %c0_25 = arith.constant 0 : index
    %34 = vector.load %arg2[%33, %c0_25] : memref<256x128xf32, #tpu.memory_space<vmem>>, vector<1x128xf32>
    %c5_26 = arith.constant 5 : index
    %c0_27 = arith.constant 0 : index
    %35 = vector.load %arg6[%c5_26, %c0_27] : memref<8x128xf32, #tpu.memory_space<vmem>>, vector<1x128xf32>
    tpu.vector_store %arg6[%c5_26, %c0_27], %34 {strides = array<i32>} : memref<8x128xf32, #tpu.memory_space<vmem>>, vector<1x128xf32>,
    %c6 = arith.constant 6 : index
    %36 = memref.load %arg1[%c6] : memref<8xi32, #tpu.memory_space<smem>>
    %c0_i32_28 = arith.constant 0 : i32
    %37 = arith.maxsi %36, %c0_i32_28 : i32
    %c255_i32_29 = arith.constant 255 : i32
    %38 = arith.minsi %37, %c255_i32_29 : i32
    %39 = arith.index_cast %38 : i32 to index
    %c0_30 = arith.constant 0 : index
    %40 = vector.load %arg2[%39, %c0_30] : memref<256x128xf32, #tpu.memory_space<vmem>>, vector<1x128xf32>
    %c6_31 = arith.constant 6 : index
    %c0_32 = arith.constant 0 : index
    %41 = vector.load %arg6[%c6_31, %c0_32] : memref<8x128xf32, #tpu.memory_space<vmem>>, vector<1x128xf32>
    tpu.vector_store %arg6[%c6_31, %c0_32], %40 {strides = array<i32>} : memref<8x128xf32, #tpu.memory_space<vmem>>, vector<1x128xf32>,
    %c7 = arith.constant 7 : index
    %42 = memref.load %arg1[%c7] : memref<8xi32, #tpu.memory_space<smem>>
    %c0_i32_33 = arith.constant 0 : i32
    %43 = arith.maxsi %42, %c0_i32_33 : i32
    %c255_i32_34 = arith.constant 255 : i32
    %44 = arith.minsi %43, %c255_i32_34 : i32
    %45 = arith.index_cast %44 : i32 to index
    %c0_35 = arith.constant 0 : index
    %46 = vector.load %arg2[%45, %c0_35] : memref<256x128xf32, #tpu.memory_space<vmem>>, vector<1x128xf32>
    %c7_36 = arith.constant 7 : index
    %c0_37 = arith.constant 0 : index
    %47 = vector.load %arg6[%c7_36, %c0_37] : memref<8x128xf32, #tpu.memory_space<vmem>>, vector<1x128xf32>
    tpu.vector_store %arg6[%c7_36, %c0_37], %46 {strides = array<i32>} : memref<8x128xf32, #tpu.memory_space<vmem>>, vector<1x128xf32>,
    %c0_38 = arith.constant 0 : index
    %c0_39 = arith.constant 0 : index
    %48 = vector.load %arg6[%c0_38, %c0_39] : memref<8x128xf32, #tpu.memory_space<vmem>>, vector<8x128xf32>
    %c0_40 = arith.constant 0 : index
    %c0_41 = arith.constant 0 : index
    %49 = vector.load %arg3[%c0_40, %c0_41] : memref<128x128xf32, #tpu.memory_space<vmem>>, vector<128x128xf32>
    %cst = arith.constant dense<0.000000e+00> : vector<8x128xf32>
    %50 = tpu.matmul %48, %49, %cst {dimension_numbers = #tpu.dot_dimension_numbers<[1], [0], [0], [1], [0, 0, 1, 1], [], []>} : vector<8x128xf32>, vector<128x128xf32>, vector<8x128xf32> -> vector<8x128xf32>
    %c0_42 = arith.constant 0 : index
    %c0_43 = arith.constant 0 : index
    %51 = vector.load %arg4[%c0_42, %c0_43] : memref<1x128xf32, #tpu.memory_space<vmem>>, vector<1x128xf32>
    %52 = vector.broadcast %51 : vector<1x128xf32> to vector<8x128xf32>
    %53 = arith.addf %50, %52 : vector<8x128xf32>
    %c0_44 = arith.constant 0 : index
    %c0_45 = arith.constant 0 : index
    %54 = vector.load %arg5[%c0_44, %c0_45] : memref<8x128xf32, #tpu.memory_space<vmem>>, vector<8x128xf32>
    tpu.vector_store %arg5[%c0_44, %c0_45], %53 {strides = array<i32>} : memref<8x128xf32, #tpu.memory_space<vmem>>, vector<8x128xf32>,
    return
  }
  func.func @transform_0(%arg0: i32, %arg1: memref<8xi32, #tpu.memory_space<smem>>) -> (i32, i32) {
    %c0_i32 = arith.constant 0 : i32
    %c0_i32_0 = arith.constant 0 : i32
    %c0_i32_1 = arith.constant 0 : i32
    return %c0_i32, %c0_i32_0 : i32, i32
  }
  func.func @transform_1(%arg0: i32, %arg1: memref<8xi32, #tpu.memory_space<smem>>) -> (i32, i32) {
    %c0_i32 = arith.constant 0 : i32
    %c0_i32_0 = arith.constant 0 : i32
    %c0_i32_1 = arith.constant 0 : i32
    return %c0_i32, %c0_i32_0 : i32, i32
  }
  func.func @transform_2(%arg0: i32, %arg1: memref<8xi32, #tpu.memory_space<smem>>) -> (i32, i32) {
    %c0_i32 = arith.constant 0 : i32
    %c0_i32_0 = arith.constant 0 : i32
    %c0_i32_1 = arith.constant 0 : i32
    return %c0_i32, %c0_i32_0 : i32, i32
  }
  func.func @transform_3(%arg0: i32, %arg1: memref<8xi32, #tpu.memory_space<smem>>) -> (i32, i32) {
    %c0_i32 = arith.constant 0 : i32
    %c0_i32_0 = arith.constant 0 : i32
    %c0_i32_1 = arith.constant 0 : i32
    return %c0_i32, %c0_i32_0 : i32, i32
  }
}

</mosaic_0001>

<bundles_post_ra>
// kernel: timestep_embedder_pallas.1
= control target key start
LH: loop header
LB: loop body
LE: loop exit
PB: predicated region body
PF: predicated region fallthrough
CT: control target
= control target key end

     0   :  { %s587_s0 = inlined_call_operand.hbm [shape: s32[8], index: 0, kind: input, shape index: {}]   ;;  %s588_s1 = inlined_call_operand.hbm [shape: f32[256,128], index: 1, kind: input, shape index: {}]   ;;  %s589_s2 = inlined_call_operand.hbm [shape: f32[128,128], index: 2, kind: input, shape index: {}]   ;;  %s590_s3 = inlined_call_operand.vmem [shape: f32[1,128], index: 3, kind: input, shape index: {}]   ;;  %s591_s4 = inlined_call_operand.hbm [shape: f32[8,128], index: 4, kind: output, shape index: {}]  }
   0x1   :  { %s380_s17 = scalar_lea.hbm %s587_s0, 16 }
   0x2   :  { %p381_p0 = scmp.ne.s32.totalorder %s587_s0, %s380_s17  ;;  %p384_p1 = scmp.lt.u32.totalorder %s380_s17, %s587_s0 }
   0x4   :  { %p386_p2 = pnand %p384_p1, %p381_p0 }
   0x6   :  { %389 = shalt.err (!%p386_p2)  }
   0x7   :  { %s464_s22 = smov [#allocation4]  }
   0x8   :  { %10 = dma.hbm_to_smem %s587_s0, 16, %s464_s22, [#allocation3] }
   0x9   :  { %456 = dma.done.wait [#allocation3], 16 }
   0xa   :  { %457 = vsyncadd [#allocation3], 4294967280 }
   0xb   :  { %12 = sfence }
   0xc   :  { %13 = vsyncpa [#allocation6], 0 }
   0xd   :  { %14 = vsyncpa [#allocation9], 0 }
   0xe   :  { %15 = vsyncpa [#allocation7], 0  ;;  %s465_s25 = smov [#allocation5]   ;;  %s390_s29 = scalar_lea.hbm %s588_s1, 4096 }
   0xf   :  { %s21_s26 = sshll.u32 %s465_s25, 4  ;;  %p391_p3 = scmp.ne.s32.totalorder %s588_s1, %s390_s29  ;;  %s22_s26 = int_to_ptr.vmem [resolvable:$true] %s21_s26 }
  0x10   :  { %p394_p4 = scmp.lt.u32.totalorder %s390_s29, %s588_s1 }
  0x12   :  { %p396_p5 = pnand %p394_p4, %p391_p3 }
  0x14   :  { %399 = shalt.err (!%p396_p5)
}
  0x15   :  { %s400_s0 = scalar_lea.vmem %s22_s26, 4096  ;;  %p405_p7 = scmp.lt.s32.totalorder %s22_s26, %s22_s26 }
  0x16   :  { %p401_p6 = scmp.ne.s32.totalorder %s22_s26, %s400_s0  ;;  %p406_p8 = scmp.lt.s32.totalorder %s400_s0, %s400_s0 }
  0x18   :  { %p407_p9 = por %p406_p8, %p405_p7 }
  0x1a   :  { %p408_p10 = pnand %p407_p9, %p401_p6 }
  0x1c   :  { %411 = shalt.err (!%p408_p10)
}
  0x1d   :  { %s466_s8 = smov 128   ;;  %s467_s9 = smov 8  }
  0x1e   :  { %27 = dma.hbm_to_vmem [thread:$0]  %s588_s1, 4096, %s22_s26, [#allocation6], %s466_s8, %s466_s8, %s467_s9  }
  0x1f   :  { %s468_s12 = smov [#allocation8]   ;;  %s412_s16 = scalar_lea.hbm %s589_s2, 2048 }
  0x20   :  { %s33_s13 = sshll.u32 %s468_s12, 4  ;;  %p413_p11 = scmp.ne.s32.totalorder %s589_s2, %s412_s16  ;;  %s34_s13 = int_to_ptr.vmem [resolvable:$true] %s33_s13 }
  0x21   :  { %p416_p12 = scmp.lt.u32.totalorder %s412_s16, %s589_s2 }
  0x23   :  { %p418_p13 = pnand %p416_p12, %p413_p11 }
  0x25   :  { %421 = shalt.err (!%p418_p13)
}
  0x26   :  { %s422_s21 = scalar_lea.vmem %s34_s13, 2048  ;;  %p427_p1 = scmp.lt.s32.totalorder %s34_s13, %s34_s13 }
  0x27   :  { %p423_p0 = scmp.ne.s32.totalorder %s34_s13, %s422_s21  ;;  %p428_p2 = scmp.lt.s32.totalorder %s422_s21, %s422_s21 }
  0x29   :  { %p429_p3 = por %p428_p2, %p427_p1 }
  0x2b   :  { %p430_p4 = pnand %p429_p3, %p423_p0 }
  0x2d   :  { %433 = shalt.err (!%p430_p4)
}
  0x2e   :  { %39 = dma.hbm_to_vmem [thread:$0]  %s589_s2, 2048, %s34_s13, [#allocation9], %s466_s8, %s466_s8, %s467_s9  }
  0x2f   :  { %458 = dma.done.wait [#allocation6], 4096  }
  0x30   :  { %459 = vsyncadd [#allocation6], 4294963200 }
  0x31   :  { %460 = dma.done.wait [#allocation9], 2048  }
  0x32   :  { %461 = vsyncadd [#allocation9], 4294965248  ;;  %v469_v0 = vmov 0.0|0.0   ;;  %vm470_vm0 = vmmov 0   ;;  %v471_v1 = vmov 0.0   ;;  %s48_s23 = sld [smem:[#allocation4]] }
  0x33   :  { %347 = vmatprep.subr.bf16.mxu0 %v469_v0  ;;  %344 = vmatprep.mubr.msk.f32.mxu0 %vm470_vm0, %v471_v1  ;;  %s236_s24 = sld [smem:[#allocation4 + $0x1]]  ;;  %s535_s25 = sld [smem:[#allocation4 + $0x2]]  ;;  %v113_v2 = vld [vmem:[#allocation8] sm:$0xff]  ;;  %v114_v3 = vld [vmem:[#allocation8 + $0x8] sm:$0xff]  ;;  %v115_v4 = vld [vmem:[#allocation8 + $0x10] sm:$0xff] }
  0x34   :  { %s537_s26 = sld [smem:[#allocation4 + $0x3]]  ;;  %s539_s27 = sld [smem:[#allocation4 + $0x4]]  ;;  %v348_v5 = vpack.c.bf16 %v114_v3, %v113_v2  ;;  %v116_v6 = vld [vmem:[#allocation8 + $0x18] sm:$0xff]  ;;  %v117_v8 = vld [vmem:[#allocation8 + $0x20] sm:$0xff]  ;;  %v118_v9 = vld [vmem:[#allocation8 + $0x28] sm:$0xff] }
  0x35   :  { %s541_s28 = sld [smem:[#allocation4 + $0x5]]  ;;  %s543_s2 = sld [smem:[#allocation4 + $0x6]]  ;;  %v351_v7 = vpack.c.bf16 %v116_v6, %v115_v4  ;;  %v354_v10 = vpack.c.bf16 %v118_v9, %v117_v8  ;;  %v119_v12 = vld [vmem:[#allocation8 + $0x30] sm:$0xff]  ;;  %v120_v13 = vld [vmem:[#allocation8 + $0x38] sm:$0xff]  ;;  %v121_v16 = vld [vmem:[#allocation8 + $0x40] sm:$0xff] }
  0x36   :  { %s545_s29 = sld [smem:[#allocation4 + $0x7]]  ;;  %349 = vmatpush3.bf16.msra.mxu0 %v348_v5  ;;  %v357_v15 = vpack.c.bf16 %v120_v13, %v119_v12  ;;  %v122_v17 = vld [vmem:[#allocation8 + $0x48] sm:$0xff]  ;;  %v123_v20 = vld [vmem:[#allocation8 + $0x50] sm:$0xff]  ;;  %v124_v21 = vld [vmem:[#allocation8 + $0x58] sm:$0xff]  ;;  %s472_s15 = smov [#allocation10]  }
  0x37   :  { %350 = vmatprep.subr.bf16.mxu0 %v469_v0  ;;  %v360_v19 = vpack.c.bf16 %v122_v17, %v121_v16  ;;  %v363_v23 = vpack.c.bf16 %v124_v21, %v123_v20  ;;  %v125_v24 = vld [vmem:[#allocation8 + $0x60] sm:$0xff]  ;;  %v126_v25 = vld [vmem:[#allocation8 + $0x68] sm:$0xff]  ;;  %v127_v29 = vld [vmem:[#allocation8 + $0x70] sm:$0xff]  ;;  %s213_s16 = sshll.u32 %s472_s15, 4  ;;  %s214_s16 = int_to_ptr.vmem [resolvable:$true] %s213_s16 }
  0x38   :  { %p49_p5 = scmp.gt.s32.totalorder %s48_s23, 0  ;;  %p231_p6 = scmp.lt.s32.totalorder %s48_s23, 255  ;;  %v366_v27 = vpack.c.bf16 %v126_v25, %v125_v24  ;;  %v128_v30 = vld [vmem:[#allocation8 + $0x78] sm:$0xff] }
  0x39   :  { %p57_p7 = scmp.gt.s32.totalorder %s236_s24, 0  ;;  %p237_p8 = scmp.lt.s32.totalorder %s236_s24, 255  ;;  %v369_v31 = vpack.c.bf16 %v128_v30, %v127_v29  ;;  %v278_v35 = vld [vmem:[%s590_s3] ss:$0 sm:$0xff] }
  0x3a   :  { %s593_s23 = smov (!%p49_p5, %s48_s23), 0  ;;  %p65_p9 = scmp.gt.s32.totalorder %s535_s25, 0  ;;  %352 = vmatpush3.bf16.msra.mxu0 %v351_v7 }
  0x3b   :  { %s595_s24 = smov (!%p57_p7, %s236_s24), 0  ;;  %s597_s23 = smov (!%p231_p6, %s593_s23), 255  ;;  %353 = vmatprep.subr.bf16.mxu0 %v469_v0 }
  0x3c   :  { %s599_s24 = smov (!%p237_p8, %s595_s24), 255  ;;  %s53_s30 = scalar_lea.vmem [#allocation5], %s597_s23 }
  0x3d   :  { %v54_v11 = vld [vmem:[%s53_s30] sm:$0x1]  ;;  %p243_p10 = scmp.lt.s32.totalorder %s535_s25, 255  ;;  %s61_s5 = scalar_lea.vmem [#allocation5], %s599_s24 }
  0x3e   :  { %55 = vst [vmem:[#allocation2] sm:$0x1] %v54_v11  ;;  %v62_v14 = vld [vmem:[%s61_s5] sm:$0x1]  ;;  %s601_s25 = smov (!%p65_p9, %s535_s25), 0  ;;  %p73_p11 = scmp.gt.s32.totalorder %s537_s26, 0  ;;  %355 = vmatpush3.bf16.msra.mxu0 %v354_v10 }
  0x3f   :  { %63 = vst [vmem:[#allocation2 + $0x1] sm:$0x1] %v62_v14  ;;  %p249_p12 = scmp.lt.s32.totalorder %s537_s26, 255  ;;  %s603_s25 = smov (!%p243_p10, %s601_s25), 255  ;;  %356 = vmatprep.subr.bf16.mxu0 %v469_v0 }
  0x40   :  { %s605_s26 = smov (!%p73_p11, %s537_s26), 0  ;;  %p81_p13 = scmp.gt.s32.totalorder %s539_s27, 0 }
  0x41   :  { %s69_s6 = scalar_lea.vmem [#allocation5], %s603_s25  ;;  %s607_s26 = smov (!%p249_p12, %s605_s26), 255 }
  0x42   :  { %v70_v18 = vld [vmem:[%s69_s6] sm:$0x1]  ;;  %s82_s7 = scalar_select %p81_p13, %s539_s27, 0  ;;  %358 = vmatpush3.bf16.msra.mxu0 %v357_v15 }
  0x43   :  { %71 = vst [vmem:[#allocation2 + $0x2] sm:$0x1] %v70_v18  ;;  %p255_p0 = scmp.lt.s32.totalorder %s539_s27, 255  ;;  %359 = vmatprep.subr.bf16.mxu0 %v469_v0  ;;  %s77_s0 = scalar_lea.vmem [#allocation5], %s607_s26 }
  0x44   :  { %v78_v22 = vld [vmem:[%s77_s0] sm:$0x1]  ;;  %p89_p1 = scmp.gt.s32.totalorder %s541_s28, 0  ;;  %p261_p2 = scmp.lt.s32.totalorder %s541_s28, 255 }
  0x45   :  { %79 = vst [vmem:[#allocation2 + $0x3] sm:$0x1] %v78_v22  ;;  %s609_s7 = smov (!%p255_p0, %s82_s7), 255  ;;  %p97_p3 = scmp.gt.s32.totalorder %s543_s2, 0 }
  0x46   :  { %s611_s28 = smov (!%p89_p1, %s541_s28), 0  ;;  %361 = vmatpush3.bf16.msra.mxu0 %v360_v19  ;;  %s85_s8 = scalar_lea.vmem [#allocation5], %s609_s7 }
  0x47   :  { %362 = vmatprep.subr.bf16.mxu0 %v469_v0  ;;  %v86_v26 = vld [vmem:[%s85_s8] sm:$0x1]  ;;  %s613_s28 = smov (!%p261_p2, %s611_s28), 255  ;;  %p267_p4 = scmp.lt.s32.totalorder %s543_s2, 255 }
  0x48   :  { %87 = vst [vmem:[#allocation2 + $0x4] sm:$0x1] %v86_v26  ;;  %s98_s9 = scalar_select %p97_p3, %s543_s2, 0 }
  0x49   :  { %s93_s10 = scalar_lea.vmem [#allocation5], %s613_s28  ;;  %p105_p5 = scmp.gt.s32.totalorder %s545_s29, 0 }
  0x4a   :  { %364 = vmatpush3.bf16.msra.mxu0 %v363_v23  ;;  %v94_v28 = vld [vmem:[%s93_s10] sm:$0x1]  ;;  %p273_p6 = scmp.lt.s32.totalorder %s545_s29, 255  ;;  %s615_s9 = smov (!%p267_p4, %s98_s9), 255 }
  0x4b   :  { %365 = vmatprep.subr.bf16.mxu0 %v469_v0  ;;  %95 = vst [vmem:[#allocation2 + $0x5] sm:$0x1] %v94_v28  ;;  %s617_s29 = smov (!%p105_p5, %s545_s29), 0  ;;  %s101_s11 = scalar_lea.vmem [#allocation5], %s615_s9 }
  0x4c   :  { %v102_v32 = vld [vmem:[%s101_s11] sm:$0x1]  ;;  %s619_s29 = smov (!%p273_p6, %s617_s29), 255  ;;  %s434_s17 = scalar_lea.vmem %s214_s16, 128 }
  0x4d   :  { %103 = vst [vmem:[#allocation2 + $0x6] sm:$0x1] %v102_v32  ;;  %s109_s12 = scalar_lea.vmem [#allocation5], %s619_s29  ;;  %p435_p7 = scmp.ne.s32.totalorder %s214_s16, %s434_s17 }
  0x4e   :  { %367 = vmatpush3.bf16.msra.mxu0 %v366_v27  ;;  %v110_v33 = vld [vmem:[%s109_s12] sm:$0x1]  ;;  %p439_p8 = scmp.lt.s32.totalorder %s214_s16, %s214_s16  ;;  %p440_p9 = scmp.lt.s32.totalorder %s434_s17, %s434_s17 }
  0x4f   :  { %368 = vmatprep.subr.bf16.mxu0 %v469_v0  ;;  %111 = vst [vmem:[#allocation2 + $0x7] sm:$0x1] %v110_v33 }
  0x50   :  { %p441_p10 = por %p440_p9, %p439_p8 }
  0x52   :  { %370 = vmatpush3.bf16.msra.mxu0 %v369_v31  ;;  %p442_p11 = pnand %p441_p10, %p435_p7 }
  0x56   :  { %v112_v34 = vld [vmem:[#allocation2] sm:$0xff] }
  0x57   :  { %345 = vmatmul.mubr.f32.vlgmr.msra.gmra.mrb[0].mxu0 %v112_v34 }
 0x12a   :  { %v202_v36 = vpop.f32.mrb[0].mxu0 }
 0x12b   :  { %v203_v37 = vadd.f32 %v278_v35, %v202_v36  ;;  %v346_v38 = vpop.f32.mrb[1].mxu0 }
 0x12d   :  { %206 = vst [vmem:[#allocation10] sm:$0xff] %v203_v37 }
 0x12e   :  { %445 = shalt.err (!%p442_p11)
}
 0x12f   :  { %s446_s20 = scalar_lea.hbm %s591_s4, 128 }
 0x130   :  { %p447_p12 = scmp.ne.s32.totalorder %s591_s4, %s446_s20  ;;  %p450_p13 = scmp.lt.u32.totalorder %s446_s20, %s591_s4 }
 0x132   :  { %p452_p0 = pnand %p450_p13, %p447_p12 }
 0x134   :  { %455 = shalt.err (!%p452_p0)
}
 0x135   :  { %216 = dma.vmem_to_hbm [thread:$0]  %s214_s16, 128, %s591_s4, [#allocation7]  }
 0x136   :  { %462 = dma.done.wait [#allocation7], 128  }
 0x137   :  { %463 = vsyncadd [#allocation7], 4294967168 }
 0x138   :  { %220 = vsyncpa [#allocation6], 1 }
 0x139   :  { %221 = vsyncpa [#allocation9], 1 }
 0x13a   :  { %222 = vsyncpa [#allocation7], 1 }

</bundles_post_ra>
